<compile_context>
chip_gen: v7x
topology: tpu7x:2x2x1
jax: 0.10.0
libtpu: 0.0.40
codegen_flags: <defaults>
</compile_context>

<pallas_src>
import numpy as np
import jax
import jax.numpy as jnp
from jax import lax
from jax.experimental import pallas as pl
from jax.experimental.pallas import tpu as pltpu


def make_kernel(k):
    k = np.asarray(k, dtype=np.float32)
    if k.ndim == 1:
        k = k[None, :] * k[:, None]
    k = k / k.sum()
    return k


def _row_phase_plan(KH, factor, pad0):
    """Polyphase plan along H.

    For each output-row phase py (= output_row % factor):
      - d:    source-row offset for iy = 0 (may be negative -> needs a top halo),
      - taps: kh indices of the correlation window that land on real rows.
    """
    plan = []
    for py in range(factor):
        kh0 = (pad0 - py) % factor
        d = -((pad0 - py) // factor)
        taps = list(range(kh0, KH, factor))
        plan.append((d, taps))
    offs = [d + m for d, taps in plan for m in range(len(taps))]
    halo_top = max(0, -min(offs)) if offs else 0
    halo_bot = max([0] + offs)
    return plan, halo_top, halo_bot


def _col_fir_matrices(k_np, factor, pad0, W, W_out):
    """Banded matrices F[kh] (W, W_out): zero-stuffing + padding + FIR + phase
    interleave along W folded into one constant matmul operand per filter row."""
    KH, KW = k_np.shape
    kflip = np.ascontiguousarray(k_np[::-1, ::-1])   # kflip[kh,kw] = k[KH-1-kh, KW-1-kw]
    F = np.zeros((KH, W, W_out), np.float32)
    for kh in range(KH):
        for j in range(W):
            for kw in range(KW):
                ox = pad0 + factor * j - kw
                if 0 <= ox < W_out:
                    F[kh, j, ox] = kflip[kh, kw]
    return F


def _vmem_capacity_bytes():
    try:
        info = pltpu.get_tpu_info()
        for name in ("vmem_capacity_bytes", "vmem_bytes", "vmem_size_bytes"):
            v = getattr(info, name, None)
            if v:
                return int(v)
    except Exception:
        pass
    return 64 * 1024 * 1024        # conservative default (v7x physical per-TC size)


def _build_kernel_body(plan, store_row, H, W, W_out):
    def kernel(x_ref, f_ref, o_ref, xpad_ref):
        B = x_ref.shape[0]
        Hp = xpad_ref.shape[1]
        cdt = xpad_ref.dtype

        # ---- fused zero-pad: zero the halo rows, drop the input block into the
        #      interior (sublane-aligned at store_row).  Done every grid step so the
        #      per-core scratch is always fully initialized. ----
        if store_row > 0:
            xpad_ref[:, :store_row, :] = jnp.zeros((B, store_row, W), cdt)
        if Hp - (store_row + H) > 0:
            xpad_ref[:, store_row + H:, :] = jnp.zeros((B, Hp - store_row - H, W), cdt)
        xpad_ref[:, store_row:store_row + H, :] = x_ref[...].astype(cdt)

        win_cache = {}

        def window(r0):                 # (B, H, W) row-tap window, shared across phases
            if r0 not in win_cache:
                win_cache[r0] = xpad_ref[:, r0:r0 + H, :]
            return win_cache[r0]

        for py, (d, taps) in enumerate(plan):
            acc = None
            for m, kh in enumerate(taps):
                fb = jnp.broadcast_to(f_ref[kh], (B, W, W_out))
                t = jnp.einsum('bhw,bwo->bho', window(store_row + d + m), fb,
                               preferred_element_type=jnp.float32,
                               precision=lax.Precision.HIGHEST)
                acc = t if acc is None else acc + t
            if acc is None:
                acc = jnp.zeros((B, H, W_out), jnp.float32)
            # Direct per-phase store (no concat temp); the wrapper refold is free.
            o_ref[:, :, py * W_out:(py + 1) * W_out] = acc.astype(o_ref.dtype)

    return kernel


def upfirdn2d_upsample(x, kernel_np, factor, pad):
    N, C, H, W = x.shape
    KH, KW = kernel_np.shape
    pad0, pad1 = pad
    u = factor

    H_out = H * u + pad0 + pad1 - KH + 1
    W_out = W * u + pad0 + pad1 - KW + 1
    # The Upsample module's pad formula always yields exactly factor*H / factor*W.
    assert H_out == u * H and W_out == u * W, "polyphase layout assumes standard Upsample padding"
    # TODO(synk): a general upfirdn2d padding would need a (non-polyphase) fallback path.

    NC = N * C
    xf = x.reshape(NC, H, W)

    plan, halo_top, halo_bot = _row_phase_plan(KH, u, pad0)

    # bf16 inputs keep bf16 MXU operands (f32 accumulate); f32 inputs compute in f32.
    compute_dtype = jnp.bfloat16 if x.dtype == jnp.bfloat16 else jnp.float32
    cbytes = jnp.dtype(compute_dtype).itemsize
    sub = 8 if cbytes == 4 else 16
    store_row = ((halo_top + sub - 1) // sub) * sub if halo_top > 0 else 0
    Hp = store_row + H + halo_bot

    F = jnp.asarray(_col_fir_matrices(kernel_np, u, pad0, W, W_out), compute_dtype)

    # ---- per-generation VMEM limit / block-batch sizing ----
    cap = _vmem_capacity_bytes()
    vmem_limit = min(int(cap * 3 // 4), 100 * 1024 * 1024)   # ~48 MiB v7x, ~96 MiB v5e/v6e
    vmem_limit = max(vmem_limit, 32 * 1024 * 1024)
    fixed = 2 * KH * W * W_out * cbytes                      # resident FIR matrices (dbl-buf)
    budget = max(vmem_limit // 2 - fixed, 1 << 16)

    ib = x.dtype.itemsize
    n_win = len({d + m for d, taps in plan for m in range(len(taps))})
    per_slice = (
        2 * H * W * ib                       # input block (double-buffered)
        + 2 * H * u * W_out * ib             # output block (double-buffered)
        + Hp * W * cbytes                    # zero-padded input scratch
        + n_win * H * W * cbytes             # materialized row-tap windows
        + KH * W * W_out * cbytes            # broadcast FIR operands
        + 3 * H * W_out * 4                  # f32 accumulators / matmul results
    )
    B = max(1, min(NC, budget // per_slice))

    # >= 4 grid steps (>= 2 per v7x TensorCore), even step count when possible.
    min_steps = min(NC, 4)
    steps = max(min_steps, -(-NC // B))
    if steps % 2 and steps < NC:
        steps += 1
    B = -(-NC // steps)
    # Prefer a nearby exact divisor (dense last block) but never collapse B.
    for cand in range(B, max(1, B // 2) - 1, -1):
        if NC % cand == 0:
            B = cand
            break
    grid = (pl.cdiv(NC, B),)

    kern = _build_kernel_body(plan, store_row, H, W, W_out)

    cost = pl.CostEstimate(
        flops=2 * KH * NC * H * W * W_out,                   # MXU MACs x 2
        transcendentals=0,
        bytes_accessed=int(x.size) * x.dtype.itemsize
        + NC * H_out * W_out * x.dtype.itemsize,
    )

    out3 = pl.pallas_call(
        kern,
        out_shape=jax.ShapeDtypeStruct((NC, H, u * W_out), x.dtype),
        grid_spec=pltpu.PrefetchScalarGridSpec(
            num_scalar_prefetch=0,
            grid=grid,
            in_specs=[pl.BlockSpec((B, H, W), lambda i: (i, 0, 0)),
                      pl.BlockSpec((KH, W, W_out), lambda i: (0, 0, 0))],
            out_specs=pl.BlockSpec((B, H, u * W_out), lambda i: (i, 0, 0)),
            scratch_shapes=[pltpu.VMEM((B, Hp, W), compute_dtype)],
        ),
        compiler_params=pltpu.CompilerParams(
            dimension_semantics=("parallel",),
            vmem_limit_bytes=vmem_limit,
        ),
        cost_estimate=cost,
    )(xf, F)

    # (NC, H, u*(u*W)) -> (N, C, u*H, u*W): pure row-major refold (no data movement).
    return out3.reshape(N, C, H_out, W_out)


class Upsample:
    def __init__(self, kernel, factor=2):
        self.factor = factor
        k = make_kernel(kernel) * factor ** 2
        self._k_np = np.asarray(k, np.float32)          # taps baked into the FIR matrices
        self.kernel = jnp.asarray(k, jnp.float32)       # mirrors the registered buffer
        p = k.shape[0] - factor
        pad0 = (p + 1) // 2 + factor - 1
        pad1 = p // 2
        self.pad = (pad0, pad1)

    def __call__(self, x):
        return upfirdn2d_upsample(x, self._k_np, self.factor, self.pad)


def ref_upsample(x, kernel, factor, pad):
    """Pure-JAX reference: dilated depthwise conv == upfirdn2d(up=factor, down=1)."""
    C = x.shape[1]
    w = jnp.flip(kernel, (0, 1))[None, None]            # (1,1,KH,KW)
    w = jnp.tile(w, (C, 1, 1, 1))                       # depthwise weight
    pad0, pad1 = pad
    return lax.conv_general_dilated(
        x, w,
        window_strides=(1, 1),
        padding=((pad0, pad1 + factor - 1), (pad0, pad1 + factor - 1)),
        lhs_dilation=(factor, factor),
        rhs_dilation=(1, 1),
        dimension_numbers=("NCHW", "OIHW", "NCHW"),
        feature_group_count=C,
        precision=lax.Precision.HIGHEST,
    )


if __name__ == "__main__":
    key = jax.random.PRNGKey(0)
    x = jax.random.normal(key, (2, 4, 16, 16), jnp.float32)

    up = Upsample([1, 3, 3, 1], factor=2)
    out = jax.block_until_ready(up(x))

    assert out.shape == (2, 4, 32, 32), out.shape
    ref = jax.block_until_ready(ref_upsample(x, up.kernel, up.factor, up.pad))
    np.testing.assert_allclose(np.asarray(out), np.asarray(ref), rtol=1e-4, atol=1e-4)

    print("KERNEL_OK")
</pallas_src>

<mosaic_0001>
module attributes {stable_mosaic.version = 11 : i64} {
  func.func @kernel(%arg0: i32, %arg1: memref<2x16x16xf32, #tpu.memory_space<vmem>>, %arg2: memref<4x16x32xf32, #tpu.memory_space<vmem>>, %arg3: memref<2x16x64xf32, #tpu.memory_space<vmem>>, %arg4: memref<2x25x16xf32, #tpu.memory_space<vmem>>) attributes {dimension_semantics = [#tpu.dimension_semantics<parallel>], iteration_bounds = array<i64: 4>, scalar_prefetch = 0 : i64, scratch_operands = 1 : i64, tpu.core_type = #tpu.core_type<tc>, window_params = [{transform_indices = @transform_0, window_bounds = array<i64: 2, 16, 16>}, {pipeline_mode = #tpu.pipeline_mode<synchronous>, transform_indices = @transform_1, window_bounds = array<i64: 4, 16, 32>}, {transform_indices = @transform_2, window_bounds = array<i64: 2, 16, 64>}]} {
    %cst = arith.constant 0.000000e+00 : f32
    %0 = vector.broadcast %cst : f32 to vector<2x8x16xf32>
    %c0 = arith.constant 0 : index
    %c0_0 = arith.constant 0 : index
    %c0_1 = arith.constant 0 : index
    %1 = vector.load %arg4[%c0, %c0_0, %c0_1] : memref<2x25x16xf32, #tpu.memory_space<vmem>>, vector<2x8x16xf32>
    tpu.vector_store %arg4[%c0, %c0_0, %c0_1], %0 {strides = array<i32>} : memref<2x25x16xf32, #tpu.memory_space<vmem>>, vector<2x8x16xf32>,
    %cst_2 = arith.constant 0.000000e+00 : f32
    %2 = vector.broadcast %cst_2 : f32 to vector<2x1x16xf32>
    %c0_3 = arith.constant 0 : index
    %c24 = arith.constant 24 : index
    %c0_4 = arith.constant 0 : index
    %3 = vector.load %arg4[%c0_3, %c24, %c0_4] : memref<2x25x16xf32, #tpu.memory_space<vmem>>, vector<2x1x16xf32>
    tpu.vector_store %arg4[%c0_3, %c24, %c0_4], %2 {strides = array<i32>} : memref<2x25x16xf32, #tpu.memory_space<vmem>>, vector<2x1x16xf32>,
    %c0_5 = arith.constant 0 : index
    %c0_6 = arith.constant 0 : index
    %c0_7 = arith.constant 0 : index
    %4 = vector.load %arg1[%c0_5, %c0_6, %c0_7] : memref<2x16x16xf32, #tpu.memory_space<vmem>>, vector<2x16x16xf32>
    %c0_8 = arith.constant 0 : index
    %c8 = arith.constant 8 : index
    %c0_9 = arith.constant 0 : index
    %5 = vector.load %arg4[%c0_8, %c8, %c0_9] : memref<2x25x16xf32, #tpu.memory_space<vmem>>, vector<2x16x16xf32>
    tpu.vector_store %arg4[%c0_8, %c8, %c0_9], %4 {strides = array<i32>} : memref<2x25x16xf32, #tpu.memory_space<vmem>>, vector<2x16x16xf32>,
    %c0_10 = arith.constant 0 : index
    %c0_11 = arith.constant 0 : index
    %c0_12 = arith.constant 0 : index
    %6 = vector.load %arg2[%c0_10, %c0_11, %c0_12] : memref<4x16x32xf32, #tpu.memory_space<vmem>>, vector<1x16x32xf32>
    %7 = vector.shape_cast %6 : vector<1x16x32xf32> to vector<16x32xf32>
    %8 = vector.shape_cast %7 : vector<16x32xf32> to vector<1x16x32xf32>
    %9 = vector.broadcast %8 : vector<1x16x32xf32> to vector<2x16x32xf32>
    %c0_13 = arith.constant 0 : index
    %c7 = arith.constant 7 : index
    %c0_14 = arith.constant 0 : index
    %10 = vector.load %arg4[%c0_13, %c7, %c0_14] : memref<2x25x16xf32, #tpu.memory_space<vmem>>, vector<2x16x16xf32>
    "tpu.trace_start"() <{level = 10 : i32, message = "bhw,bwo->bho"}> : () -> ()
    %cst_15 = arith.constant dense<0.000000e+00> : vector<2x16x32xf32>
    %11 = tpu.matmul %10, %9, %cst_15 {dimension_numbers = #tpu.dot_dimension_numbers<[2], [1], [1], [2], [0, 0, 0, 1, 1, 2], [0], [0]>, precision = #tpu.contract_precision<fp32>} : vector<2x16x16xf32>, vector<2x16x32xf32>, vector<2x16x32xf32> -> vector<2x16x32xf32>
    "tpu.trace_stop"() : () -> ()
    %c2 = arith.constant 2 : index
    %c0_16 = arith.constant 0 : index
    %c0_17 = arith.constant 0 : index
    %12 = vector.load %arg2[%c2, %c0_16, %c0_17] : memref<4x16x32xf32, #tpu.memory_space<vmem>>, vector<1x16x32xf32>
    %13 = vector.shape_cast %12 : vector<1x16x32xf32> to vector<16x32xf32>
    %14 = vector.shape_cast %13 : vector<16x32xf32> to vector<1x16x32xf32>
    %15 = vector.broadcast %14 : vector<1x16x32xf32> to vector<2x16x32xf32>
    %c0_18 = arith.constant 0 : index
    %c8_19 = arith.constant 8 : index
    %c0_20 = arith.constant 0 : index
    %16 = vector.load %arg4[%c0_18, %c8_19, %c0_20] : memref<2x25x16xf32, #tpu.memory_space<vmem>>, vector<2x16x16xf32>
    "tpu.trace_start"() <{level = 10 : i32, message = "bhw,bwo->bho"}> : () -> ()
    %cst_21 = arith.constant dense<0.000000e+00> : vector<2x16x32xf32>
    %17 = tpu.matmul %16, %15, %cst_21 {dimension_numbers = #tpu.dot_dimension_numbers<[2], [1], [1], [2], [0, 0, 0, 1, 1, 2], [0], [0]>, precision = #tpu.contract_precision<fp32>} : vector<2x16x16xf32>, vector<2x16x32xf32>, vector<2x16x32xf32> -> vector<2x16x32xf32>
    "tpu.trace_stop"() : () -> ()
    %18 = arith.addf %11, %17 : vector<2x16x32xf32>
    %c0_22 = arith.constant 0 : index
    %c0_23 = arith.constant 0 : index
    %c0_24 = arith.constant 0 : index
    %19 = vector.load %arg3[%c0_22, %c0_23, %c0_24] : memref<2x16x64xf32, #tpu.memory_space<vmem>>, vector<2x16x32xf32>
    tpu.vector_store %arg3[%c0_22, %c0_23, %c0_24], %18 {strides = array<i32>} : memref<2x16x64xf32, #tpu.memory_space<vmem>>, vector<2x16x32xf32>,
    %c1 = arith.constant 1 : index
    %c0_25 = arith.constant 0 : index
    %c0_26 = arith.constant 0 : index
    %20 = vector.load %arg2[%c1, %c0_25, %c0_26] : memref<4x16x32xf32, #tpu.memory_space<vmem>>, vector<1x16x32xf32>
    %21 = vector.shape_cast %20 : vector<1x16x32xf32> to vector<16x32xf32>
    %22 = vector.shape_cast %21 : vector<16x32xf32> to vector<1x16x32xf32>
    %23 = vector.broadcast %22 : vector<1x16x32xf32> to vector<2x16x32xf32>
    "tpu.trace_start"() <{level = 10 : i32, message = "bhw,bwo->bho"}> : () -> ()
    %cst_27 = arith.constant dense<0.000000e+00> : vector<2x16x32xf32>
    %24 = tpu.matmul %16, %23, %cst_27 {dimension_numbers = #tpu.dot_dimension_numbers<[2], [1], [1], [2], [0, 0, 0, 1, 1, 2], [0], [0]>, precision = #tpu.contract_precision<fp32>} : vector<2x16x16xf32>, vector<2x16x32xf32>, vector<2x16x32xf32> -> vector<2x16x32xf32>
    "tpu.trace_stop"() : () -> ()
    %c3 = arith.constant 3 : index
    %c0_28 = arith.constant 0 : index
    %c0_29 = arith.constant 0 : index
    %25 = vector.load %arg2[%c3, %c0_28, %c0_29] : memref<4x16x32xf32, #tpu.memory_space<vmem>>, vector<1x16x32xf32>
    %26 = vector.shape_cast %25 : vector<1x16x32xf32> to vector<16x32xf32>
    %27 = vector.shape_cast %26 : vector<16x32xf32> to vector<1x16x32xf32>
    %28 = vector.broadcast %27 : vector<1x16x32xf32> to vector<2x16x32xf32>
    %c0_30 = arith.constant 0 : index
    %c9 = arith.constant 9 : index
    %c0_31 = arith.constant 0 : index
    %29 = vector.load %arg4[%c0_30, %c9, %c0_31] : memref<2x25x16xf32, #tpu.memory_space<vmem>>, vector<2x16x16xf32>
    "tpu.trace_start"() <{level = 10 : i32, message = "bhw,bwo->bho"}> : () -> ()
    %cst_32 = arith.constant dense<0.000000e+00> : vector<2x16x32xf32>
    %30 = tpu.matmul %29, %28, %cst_32 {dimension_numbers = #tpu.dot_dimension_numbers<[2], [1], [1], [2], [0, 0, 0, 1, 1, 2], [0], [0]>, precision = #tpu.contract_precision<fp32>} : vector<2x16x16xf32>, vector<2x16x32xf32>, vector<2x16x32xf32> -> vector<2x16x32xf32>
    "tpu.trace_stop"() : () -> ()
    %31 = arith.addf %24, %30 : vector<2x16x32xf32>
    %c0_33 = arith.constant 0 : index
    %c0_34 = arith.constant 0 : index
    %c32 = arith.constant 32 : index
    %32 = vector.load %arg3[%c0_33, %c0_34, %c32] : memref<2x16x64xf32, #tpu.memory_space<vmem>>, vector<2x16x32xf32>
    tpu.vector_store %arg3[%c0_33, %c0_34, %c32], %31 {strides = array<i32>} : memref<2x16x64xf32, #tpu.memory_space<vmem>>, vector<2x16x32xf32>,
    return
  }
  func.func @transform_0(%arg0: i32) -> (i32, i32, i32) {
    %c0_i32 = arith.constant 0 : i32
    %c0_i32_0 = arith.constant 0 : i32
    %c0_i32_1 = arith.constant 0 : i32
    return %arg0, %c0_i32, %c0_i32_0 : i32, i32, i32
  }
  func.func @transform_1(%arg0: i32) -> (i32, i32, i32) {
    %c0_i32 = arith.constant 0 : i32
    %c0_i32_0 = arith.constant 0 : i32
    %c0_i32_1 = arith.constant 0 : i32
    %c0_i32_2 = arith.constant 0 : i32
    return %c0_i32, %c0_i32_0, %c0_i32_1 : i32, i32, i32
  }
  func.func @transform_2(%arg0: i32) -> (i32, i32, i32) {
    %c0_i32 = arith.constant 0 : i32
    %c0_i32_0 = arith.constant 0 : i32
    %c0_i32_1 = arith.constant 0 : i32
    return %arg0, %c0_i32, %c0_i32_0 : i32, i32, i32
  }
}

</mosaic_0001>

<bundles_post_ra>
// kernel: tpu_custom_call.1
= control target key start
LH: loop header
LB: loop body
LE: loop exit
PB: predicated region body
PF: predicated region fallthrough
CT: control target
= control target key end

     0   :  { %7 = vsyncpa [#allocation4], 0  ;;  %s5911_s0 = inlined_call_operand.hbm [shape: f32[8,16,16], index: 0, kind: input, shape index: {}]   ;;  %s5912_s1 = inlined_call_operand.hbm [shape: f32[4,16,32], index: 1, kind: input, shape index: {}]   ;;  %s5913_s2 = inlined_call_operand.hbm [shape: f32[8,16,64], index: 2, kind: output, shape index: {}]  }
   0x1   :  { %9 = vsyncpa [#allocation4 + $0x1], 0 }
   0x2   :  { %10 = vsyncpa [#allocation7], 0 }
   0x3   :  { %11 = vsyncpa [#allocation5], 0 }
   0x4   :  { %13 = vsyncpa [#allocation5 + $0x1], 0  ;;  %s5440_s9 = smov 0   ;;  %s5442_s10 = smov 0  }
   0x5   :  { %s5444_s11 = smov 0   ;;  %s5446_s12 = smov 0  }
   0x6 LB: > { %s5461_s13 = sadd.s32 4294967295, %s5414_s12   ;;  %s4393_s14 = sadd.s32 4294967294, %s5414_s12   ;;  %s5414_s12 = sphi %s5446_s12, %s5932_s12   ;;  %s5410_s11 = sphi %s5444_s11, %s5931_s11   ;;  %s5406_s10 = sphi %s5442_s10, %s5930_s10   ;;  %s5402_s9 = sphi %s5440_s9, %s5929_s9  }
   0x7   : > { %p39_p0 = scmp.ne.s32.totalorder %s5406_s10, %s5402_s9  ;;  %p5914_p1 = scmp.eq.s32.totalorder %s5461_s13, 0 }
   0x8   : > { %p90_p3 = scmp.eq.s32.totalorder %s4393_s14, 3  ;;  %p4394_p5 = scmp.ge.s32.totalorder %s5414_s12, 1 }
   0x9   : > { %p5470_p4 = por %p5914_p1, %p39_p0  ;;  %p97_p7 = scmp.lt.s32.totalorder %s5414_s12, 5 }
   0xa   : > { %p5475_p6 = por %p90_p3, %p39_p0  ;;  %s5416_s18 = smov [#allocation6]  }
   0xb   : > { %s5917_s15 = scalar_select %p5470_p4, 1, 0 }
   0xc   : > { %s5918_s16 = scalar_select %p5475_p6, 1, 0 }
   0xd   : > { %p5480_p8 = pnand %p4394_p5, %p97_p7  ;;  %s109_s19 = sshll.u32 %s5416_s18, 4  ;;  %s110_s19 = int_to_ptr.vmem [resolvable:$true] %s109_s19 }
   0xe   : > { %s5493_s21 = sadd.s32 1, %s5414_s12   ;;  %s26_s22 = sadd.s32 1, %s5410_s11 }
   0xf   : > { %s5919_s17 = scalar_select %p5480_p8, 1, 0 }
  0x10   : > { %p5231_p9 = pneg %p5480_p8  ;;  %s23_s23 = ssub.s32 %s5414_s12, %s5493_s21 }
  0x11   : > { %s5286_s26 = scalar_lea.hbm %s5912_s1, 1024 }
  0x12   : > { %p5488_p10 = pnand %p5231_p9, %p5914_p1  ;;  %p5287_p11 = scmp.ne.s32.totalorder %s5912_s1, %s5286_s26 }
  0x13   : > { %p5293_p3 = scmp.lt.u32.totalorder %s5286_s26, %s5912_s1 }
  0x14   : > { %p5288_p12 = pneg %p5488_p10 }
  0x16   : > { %p5289_p13 = pnand %p5288_p12, %p5287_p11 }
  0x18   : > { %p5290_p0 = pneg %p5289_p13 }
  0x1a   : > { %p5295_p5 = pnand %p5293_p3, %p5290_p0 }
  0x1c   : > { %5298 = shalt.err (!%p5295_p5)
}
  0x1d   : > { %s5299_s3 = scalar_lea.vmem %s110_s19, 1024  ;;  %p5307_p2 = scmp.lt.s32.totalorder %s110_s19, %s110_s19 }
  0x1e   : > { %p5300_p7 = scmp.ne.s32.totalorder %s110_s19, %s5299_s3  ;;  %p5308_p6 = scmp.lt.s32.totalorder %s5299_s3, %s5299_s3 }
  0x20   : > { %p5302_p9 = pnand %p5300_p7, %p5288_p12  ;;  %p5309_p4 = por %p5308_p6, %p5307_p2 }
  0x22   : > { %p5303_p1 = pneg %p5302_p9 }
  0x24   : > { %p5310_p8 = pnand %p5309_p4, %p5303_p1 }
  0x26   : > { %5313 = shalt.err (!%p5310_p8)
}
  0x27   : > { %s5417_s4 = smov 128   ;;  %s5418_s5 = smov 8  }
  0x28   : > { %5234 = dma.hbm_to_vmem [thread:$0]  (!%p5488_p10), %s5912_s1, 1024, %s110_s19, [#allocation7], %s5417_s4, %s5417_s4, %s5418_s5  }
  0x29   : > { %p24_p1 = scmp.eq.s32.totalorder %s23_s23, 0  ;;  %p33_p2 = scmp.ne.s32.totalorder %s5410_s11, %s5406_s10 }
  0x2a   : > { %p34_p4 = scmp.eq.s32.totalorder %s5414_s12, 0  ;;  %p5244_p6 = scmp.lt.s32.totalorder %s5414_s12, 4 }
  0x2b   : > { %s5522_s8 = scalar_select %p24_p1, %s5410_s11, %s26_s22  }
  0x2c   : > { %p35_p8 = por %p34_p4, %p33_p2  ;;  %p5921_p11 = scmp.eq.s32.totalorder %s5461_s13, 3 }
  0x2d   : > { %s123_s18 = sand.u32 1, %s5410_s11   ;;  %s4412_s20 = sshll.u32 %s5414_s12, 9 }
  0x2e   : > { %p5526_p12 = por %p5921_p11, %p33_p2  ;;  %s4397_s24 = sshll.u32 %s123_s18, 5 }
  0x2f   : > { %s5535_s27 = scalar_lea.hbm %s5911_s0, %s4412_s20  ;;  %s127_s19 = scalar_lea.vmem [#allocation3], %s4397_s24 }
  0x30   : > { %s135_s22 = sshll.u32 %s127_s19, 4  ;;  %p5537_p10 = pnand %p5244_p6, %p35_p8  ;;  %s5541_s22 = int_to_ptr.vmem [resolvable:$true] %s135_s22 }
  0x31   : > { %s5543_s28 = scalar_lea.sflag [#allocation4], %s123_s18  ;;  %s5314_s29 = scalar_lea.hbm %s5535_s27, 512 }
  0x32   : > { %p5315_p13 = scmp.ne.s32.totalorder %s5535_s27, %s5314_s29  ;;  %p5316_p0 = pneg %p5537_p10 }
  0x33   : > { %s5319_s6 = scalar_lea.hbm %s5911_s0, 2048  ;;  %p5320_p7 = scmp.lt.u32.totalorder %s5535_s27, %s5911_s0 }
  0x34   : > { %p5317_p3 = pnand %p5316_p0, %p5315_p13  ;;  %p5321_p9 = scmp.lt.u32.totalorder %s5319_s6, %s5314_s29 }
  0x35   : > { %p5323_p2 = scmp.lt.u32.totalorder %s5314_s29, %s5535_s27 }
  0x36   : > { %p5318_p5 = pneg %p5317_p3  ;;  %p5322_p1 = por %p5321_p9, %p5320_p7 }
  0x38   : > { %p5324_p4 = por %p5323_p2, %p5322_p1 }
  0x3a   : > { %p5325_p6 = pnand %p5324_p4, %p5318_p5 }
  0x3c   : > { %5328 = shalt.err (!%p5325_p6)
}
  0x3d   : > { %s5329_s18 = scalar_lea.vmem %s5541_s22, 512  ;;  %s5419_s24 = smov [#allocation3]  }
  0x3e   : > { %p5330_p8 = scmp.ne.s32.totalorder %s5541_s22, %s5329_s18  ;;  %s5334_s25 = sshll.u32 %s5419_s24, 4  ;;  %s5335_s25 = int_to_ptr.vmem [resolvable:$false] %s5334_s25 }
  0x3f   : > { %s5336_s26 = scalar_lea.vmem %s5335_s25, 1024  ;;  %p5337_p3 = scmp.lt.s32.totalorder %s5541_s22, %s5335_s25 }
  0x40   : > { %p5332_p11 = pnand %p5330_p8, %p5316_p0  ;;  %p5338_p7 = scmp.lt.s32.totalorder %s5336_s26, %s5329_s18 }
  0x42   : > { %p5333_p13 = pneg %p5332_p11  ;;  %p5339_p9 = por %p5338_p7, %p5337_p3 }
  0x44   : > { %p5340_p1 = pnand %p5339_p9, %p5333_p13 }
  0x46   : > { %5343 = shalt.err (!%p5340_p1)
}
  0x47   : > { %5238 = dma.hbm_to_vmem [thread:$0]  (!%p5537_p10), %s5535_s27, 512, %s5541_s22, %s5543_s28, %s5417_s4, %s5417_s4, %s5418_s5  }
  0x48   : > { %p5924_p0 = scmp.ne.s32.totalorder %s5919_s17, 0 }
  0x49   : > { %s5577_s19 = sand.u32 (!%p5924_p0), 1, %s5406_s10   ;;  %p5925_p5 = scmp.ne.s32.totalorder (!%p5924_p0), %s5917_s15, 0 }
  0x4a   : > { %147 = sbr.rel (%p5924_p0) target bundleno = 636 (0x27c), region = 28  ;;  %s4402_s29 = sshll.u32 (!%p5924_p0), %s5577_s19, 5 }
  0x4b   : > { %s150_s30 = scalar_lea.sflag (!%p5924_p0), [#allocation4], %s5577_s19  ;;  %s153_s23 = scalar_lea.vmem (!%p5924_p0), [#allocation3], %s4402_s29 }
  0x51   : > { %5389 = dma.done.wait (%p5925_p5), %s150_s30, 512  }
  0x52   : > { %5391 = vsyncadd (%p5925_p5), %s150_s30, 4294966784  ;;  %p5926_p10 = scmp.eq.s32.totalorder %s5461_s13, 0 }
  0x54   : > { %5393 = dma.done.wait (%p5926_p10), [#allocation7], 1024   ;;  %p5927_p2 = pmov %p5926_p10 }
  0x55   : > { %vm180_vm0 = vcmask 130048   ;;  %vm183_vm1 = vcmask 122880   ;;  %v5420_v0 = vmov 0.0   ;;  %v201_v1 = vld [vmem:[#allocation6 + $0x20] sm:$0xff]  ;;  %v202_v2 = vld [vmem:[#allocation6 + $0x28] sm:$0xff]  ;;  %v188_v6 = vld [vmem:[%s153_s23 + $0x10] sm:$0xff] }
  0x56   : > { %5395 = vsyncadd (%p5927_p2), [#allocation7], 4294966272  ;;  %181 = vst.msk [vmem:[#allocation2] sm:$0xff] %vm180_vm0, %v5420_v0  ;;  %v186_v3 = vld [vmem:[%s153_s23] sm:$0xff]  ;;  %v214_v4 = vand.u32 4294901760, %v201_v1  ;;  %v217_v5 = vand.u32 4294901760, %v202_v2 }
  0x57   : > { %182 = vst.msk [vmem:[#allocation2 + $0x20] sm:$0xff] %vm180_vm0, %v5420_v0  ;;  %190 = vst.msk [vmem:[#allocation2 + $0x8] sm:$0xff] %vm180_vm0, %v186_v3  ;;  %v187_v7 = vld [vmem:[%s153_s23 + $0x8] sm:$0xff]  ;;  %v189_v8 = vld [vmem:[%s153_s23 + $0x18] sm:$0xff]  ;;  %vm2239_vm2 = vcmask 261120   ;;  %s177_s15 = scalar_lea.vmem [#allocation8], %s4402_s29 }
  0x58   : > { %184 = vst.msk [vmem:[#allocation2 + $0x18] sm:$0x1] %vm183_vm1, %v5420_v0  ;;  %185 = vst.msk [vmem:[#allocation2 + $0x38] sm:$0x1] %vm183_vm1, %v5420_v0  ;;  %v5597_v9 = vpack.c.bf16 %v217_v5, %v214_v4  ;;  %v5599_v10 = vsub.f32 %v201_v1, %v214_v4  ;;  %v309_v11 = vsub.f32 %v202_v2, %v217_v5  ;;  %v194_v49 = vld [vmem:[#allocation6] sm:$0xff]  ;;  %v195_v50 = vld [vmem:[#allocation6 + $0x8] sm:$0xff] }
  0x59   : > { %192 = vst.msk [vmem:[#allocation2 + $0x28] sm:$0xff] %vm180_vm0, %v188_v6  ;;  %191 = vst.msk [vmem:[#allocation2 + $0x10] sm:$0xff] %vm180_vm0, %v187_v7  ;;  %v1230_v53 = vand.u32 4294901760, %v194_v49  ;;  %v1233_v54 = vand.u32 4294901760, %v195_v50  ;;  %s5421_s17 = smov 32   ;;  %vm4290_vm3 = vcmask 523520  }
  0x5a   : > { %193 = vst.msk [vmem:[#allocation2 + $0x30] sm:$0xff] %vm180_vm0, %v189_v8  ;;  %4944 = vmatprep.subr.bf16.mxu0 %v5597_v9  ;;  %4968 = vmatprep.subr.bf16.mxu1 %v5597_v9  ;;  %v303_v12 = vand.u32 4294901760, %v5599_v10  ;;  %v310_v13 = vand.u32 4294901760, %v309_v11  ;;  %v4951_v47 = vpack.c.bf16 %v309_v11, %v5599_v10  ;;  %s4414_s4 = sshll.u32 %s5461_s13, 9  ;;  %s4310_s5 = sshll.u32 %s177_s15, 4  ;;  %s5868_s5 = int_to_ptr.vmem [resolvable:$true] %s4310_s5 }
  0x5b   : > { %4946 = vmatpush3.bf16.msra.mxu0 %v5597_v9  ;;  %4970 = vmatpush3.bf16.msra.mxu1 %v5597_v9  ;;  %v5682_v59 = vsub.f32 %v194_v49, %v1230_v53  ;;  %v5684_v60 = vsub.f32 %v195_v50, %v1233_v54  ;;  %v5709_v8 = vpack.c.bf16 %v1233_v54, %v1230_v53  ;;  %s5866_s28 = scalar_lea.hbm %s5913_s2, %s4414_s4  ;;  %s4296_s3 = scalar_lea.sflag [#allocation5], %s5577_s19 }
  0x5c   : > { %v304_v14 = vsub.f32 %v5599_v10, %v303_v12  ;;  %v311_v15 = vsub.f32 %v309_v11, %v310_v13  ;;  %v4959_v48 = vpack.c.bf16 %v310_v13, %v303_v12  ;;  %s5344_s13 = scalar_lea.vmem %s5868_s5, 512  ;;  %s5422_s6 = smov [#allocation8]  }
  0x5d   : > { %v1319_v2 = vand.u32 4294901760, %v5682_v59  ;;  %v1326_v3 = vand.u32 4294901760, %v5684_v60  ;;  %p5345_p4 = scmp.ne.s32.totalorder %s5868_s5, %s5344_s13  ;;  %s5348_s7 = sshll.u32 %s5422_s6, 4  ;;  %s5349_s7 = int_to_ptr.vmem [resolvable:$false] %s5348_s7 }
  0x5e   : > { %v203_v16 = vld [vmem:[#allocation2 + $0x8] sm:$0xff]  ;;  %v305_v18 = vand.u32 4294901760, %v304_v14  ;;  %v312_v19 = vand.u32 4294901760, %v311_v15  ;;  %s5350_s20 = scalar_lea.vmem %s5349_s7, 1024  ;;  %p5351_p11 = scmp.lt.s32.totalorder %s5868_s5, %s5349_s7 }
  0x5f   : > { %v208_v17 = vsel %vm180_vm0, %v203_v16, 0  ;;  %v196_v51 = vld [vmem:[#allocation2 + $0x7] sm:$0xff]  ;;  %v1320_v10 = vsub.f32 %v5682_v59, %v1319_v2  ;;  %v1327_v11 = vsub.f32 %v5684_v60, %v1326_v3  ;;  %p5346_p6 = pnand %p5345_p4, %p5526_p12  ;;  %p5352_p13 = scmp.lt.s32.totalorder %s5350_s20, %s5344_s13 }
  0x60   : > { %v205_v20 = vld [vmem:[#allocation2 + $0x28] sm:$0xff]  ;;  %v204_v21 = vld [vmem:[#allocation2 + $0x10] sm:$0xff]  ;;  %v5608_v23 = vand.u32 4294901760, %v208_v17  ;;  %v4947_v27 = vpack.c.bf16 %v312_v19, %v305_v18  ;;  %v1224_v55 = vsel %vm180_vm0, %v196_v51, 0 }
  0x61   : > { %v206_v22 = vld [vmem:[#allocation2 + $0x30] sm:$0xff]  ;;  %v716_v24 = vsel %vm180_vm0, %v205_v20, 0  ;;  %v211_v25 = vsel %vm180_vm0, %v204_v21, 0  ;;  %v198_v52 = vld [vmem:[#allocation2 + $0x27] sm:$0xff]  ;;  %v5680_v57 = vand.u32 4294901760, %v1224_v55  ;;  %v1321_v16 = vand.u32 4294901760, %v1320_v10  ;;  %p5347_p8 = pneg %p5346_p6  ;;  %p5353_p3 = por %p5352_p13, %p5351_p11 }
  0x62   : > { %v719_v26 = vsel %vm180_vm0, %v206_v22, 0  ;;  %v5613_v28 = vand.u32 4294901760, %v716_v24  ;;  %v5615_v29 = vand.u32 4294901760, %v211_v25  ;;  %v5620_v31 = vsub.f32 %v208_v17, %v5608_v23  ;;  %4948 = vmatprep.subr.bf16.mxu0 %v4947_v27  ;;  %4972 = vmatprep.subr.bf16.mxu1 %v4947_v27  ;;  %v197_v58 = vld [vmem:[#allocation2 + $0xf] sm:$0xff] }
  0x63   : > { %v5617_v30 = vand.u32 4294901760, %v719_v26  ;;  %v1732_v56 = vsel %vm180_vm0, %v198_v52, 0  ;;  %v199_v62 = vld [vmem:[#allocation2 + $0x2f] sm:$0xff]  ;;  %v1227_v63 = vsel %vm180_vm0, %v197_v58, 0  ;;  %v5693_v0 = vsub.f32 %v1224_v55, %v5680_v57  ;;  %p5354_p7 = pnand %p5353_p3, %p5347_p8 }
  0x64   : > { %v5623_v32 = vsub.f32 %v716_v24, %v5613_v28  ;;  %v5626_v33 = vsub.f32 %v211_v25, %v5615_v29  ;;  %v5632_v35 = vand.u32 4294901760, %v5620_v31  ;;  %v5686_v61 = vand.u32 4294901760, %v1732_v56  ;;  %v2251_v49 = vld [vmem:[#allocation2 + $0x11] sm:$0xff] }
  0x65   : > { %v5629_v34 = vsub.f32 %v719_v26, %v5617_v30  ;;  %v1735_v1 = vsel %vm180_vm0, %v199_v62, 0  ;;  %v5704_v5 = vand.u32 4294901760, %v1227_v63  ;;  %v1298_v7 = vand.u32 4294901760, %v5693_v0  ;;  %v2253_v53 = vld [vmem:[#allocation2 + $0x31] sm:$0xff] }
  0x66   : > { %v5635_v36 = vand.u32 4294901760, %v5623_v32  ;;  %v5638_v37 = vand.u32 4294901760, %v5626_v33  ;;  %v283_v39 = vsub.f32 %v5620_v31, %v5632_v35  ;;  %v5701_v4 = vsub.f32 %v1732_v56, %v5686_v61 }
  0x67   : > { %v5641_v38 = vand.u32 4294901760, %v5629_v34  ;;  %v5706_v6 = vand.u32 4294901760, %v1735_v1  ;;  %v5716_v13 = vsub.f32 %v1227_v63, %v5704_v5  ;;  %v1299_v15 = vsub.f32 %v5693_v0, %v1298_v7 }
  0x68   : > { %v791_v40 = vsub.f32 %v5623_v32, %v5635_v36  ;;  %v293_v41 = vsub.f32 %v5626_v33, %v5638_v37  ;;  %v5651_v43 = vand.u32 4294901760, %v283_v39  ;;  %v1806_v12 = vand.u32 4294901760, %v5701_v4 }
  0x69   : > { %v801_v42 = vsub.f32 %v5629_v34, %v5641_v38  ;;  %v5721_v14 = vsub.f32 %v1735_v1, %v5706_v6  ;;  %v1328_v17 = vand.u32 4294901760, %v1327_v11  ;;  %v1308_v19 = vand.u32 4294901760, %v5716_v13 }
  0x6a   : > { %v5653_v44 = vand.u32 4294901760, %v791_v40  ;;  %v5655_v45 = vand.u32 4294901760, %v293_v41  ;;  %4611 = vmatprep.mubr.f32.mxu0 %v5651_v43  ;;  %v1807_v18 = vsub.f32 %v5701_v4, %v1806_v12  ;;  %v1300_v21 = vand.u32 4294901760, %v1299_v15  ;;  %v2248_v41 = vld [vmem:[#allocation6 + $0x30] sm:$0xff] }
  0x6b   : > { %v5657_v46 = vand.u32 4294901760, %v801_v42  ;;  %v1816_v20 = vand.u32 4294901760, %v5721_v14  ;;  %v1309_v24 = vsub.f32 %v5716_v13, %v1308_v19  ;;  %v4999_v39 = vpack.c.bf16 %v5684_v60, %v5682_v59  ;;  %v2249_v42 = vld [vmem:[#allocation6 + $0x38] sm:$0xff] }
  0x6c   : > { %4653 = vmatprep.mubr.f32.mxu1 %v5653_v44  ;;  %4612 = vmatmul.mubr.f32.vlgmr.msra.gmra.mrb[0].mxu0 %v5655_v45  ;;  %v1808_v22 = vand.u32 4294901760, %v1807_v18  ;;  %v5007_v40 = vpack.c.bf16 %v1326_v3, %v1319_v2  ;;  %v2261_v50 = vand.u32 4294901760, %v2248_v41  ;;  %v2264_v51 = vand.u32 4294901760, %v2249_v42 }
  0x6d   : > { %4950 = vmatpush3.bf16.msra.mxu0 %v4947_v27  ;;  %4654 = vmatmul.mubr.f32.vlgmr.msra.gmra.mrb[0].mxu1 %v5657_v46  ;;  %v1817_v25 = vsub.f32 %v5721_v14, %v1816_v20  ;;  %v1310_v26 = vand.u32 4294901760, %v1309_v24  ;;  %v2258_v55 = vsel %vm180_vm0, %v2251_v49, 0  ;;  %v2766_v58 = vsel %vm180_vm0, %v2253_v53, 0 }
  0x6e   : > { %4974 = vmatpush3.bf16.msra.mxu1 %v4947_v27  ;;  %4618 = vmatprep.mubr.f32.mxu0 %v5608_v23  ;;  %v5758_v59 = vsub.f32 %v2248_v41, %v2261_v50  ;;  %v5760_v60 = vsub.f32 %v2249_v42, %v2264_v51  ;;  %v5764_v63 = vand.u32 4294901760, %v2258_v55 }
  0x6f   : > { %4952 = vmatprep.subr.bf16.mxu0 %v4951_v47  ;;  %4660 = vmatprep.mubr.f32.mxu1 %v5613_v28  ;;  %v1818_v27 = vand.u32 4294901760, %v1817_v25 }
  0x70   : > { %4976 = vmatprep.subr.bf16.mxu1 %v4951_v47  ;;  %v2350_v2 = vand.u32 4294901760, %v5758_v59  ;;  %v2357_v3 = vand.u32 4294901760, %v5760_v60 }
  0x74   : > { %4619 = vmatmul.mubr.f32.vlgmr.msra.gmra.mrb[0].mxu0 %v5615_v29 }
  0x75   : > { %4954 = vmatpush3.bf16.msra.mxu0 %v4951_v47  ;;  %4661 = vmatmul.mubr.f32.vlgmr.msra.gmra.mrb[0].mxu1 %v5617_v30 }
  0x76   : > { %4978 = vmatpush3.bf16.msra.mxu1 %v4951_v47  ;;  %4625 = vmatprep.mubr.f32.mxu0 %v5620_v31  ;;  %v2250_v47 = vld [vmem:[#allocation2 + $0x9] sm:$0xff] }
  0x77   : > { %4956 = vmatprep.subr.bf16.mxu0 %v5597_v9  ;;  %4667 = vmatprep.mubr.f32.mxu1 %v5623_v32  ;;  %v2255_v52 = vsel %vm180_vm0, %v2250_v47, 0 }
  0x78   : > { %4980 = vmatprep.subr.bf16.mxu1 %v5597_v9  ;;  %v5755_v56 = vand.u32 4294901760, %v2255_v52 }
  0x7a   : > { %v5770_v1 = vsub.f32 %v2255_v52, %v5755_v56 }
  0x7c   : > { %4626 = vmatmul.mubr.f32.vlgmr.msra.gmra.mrb[0].mxu0 %v5626_v33  ;;  %v2329_v11 = vand.u32 4294901760, %v5770_v1 }
  0x7d   : > { %4958 = vmatpush3.bf16.msra.mxu0 %v5597_v9  ;;  %4668 = vmatmul.mubr.f32.vlgmr.msra.gmra.mrb[0].mxu1 %v5629_v34 }
  0x7e   : > { %4982 = vmatpush3.bf16.msra.mxu1 %v5597_v9  ;;  %4632 = vmatprep.mubr.f32.mxu0 %v5632_v35  ;;  %v2330_v18 = vsub.f32 %v5770_v1, %v2329_v11 }
  0x7f   : > { %4960 = vmatprep.subr.bf16.mxu0 %v4959_v48  ;;  %4674 = vmatprep.mubr.f32.mxu1 %v5635_v36 }
  0x80   : > { %4984 = vmatprep.subr.bf16.mxu1 %v4959_v48  ;;  %v2331_v24 = vand.u32 4294901760, %v2330_v18 }
  0x84   : > { %4633 = vmatmul.mubr.f32.vlgmr.msra.gmra.mrb[0].mxu0 %v5638_v37 }
  0x85   : > { %4962 = vmatpush3.bf16.msra.mxu0 %v4959_v48  ;;  %4675 = vmatmul.mubr.f32.vlgmr.msra.gmra.mrb[0].mxu1 %v5641_v38 }
  0x86   : > { %4986 = vmatpush3.bf16.msra.mxu1 %v4959_v48  ;;  %4639 = vmatprep.mubr.f32.mxu0 %v5608_v23  ;;  %v2252_v48 = vld [vmem:[#allocation2 + $0x29] sm:$0xff] }
  0x87   : > { %4964 = vmatprep.subr.bf16.mxu0 %v5597_v9  ;;  %4681 = vmatprep.mubr.f32.mxu1 %v5613_v28  ;;  %v2763_v54 = vsel %vm180_vm0, %v2252_v48, 0 }
  0x88   : > { %4988 = vmatprep.subr.bf16.mxu1 %v5597_v9  ;;  %v5762_v62 = vand.u32 4294901760, %v2763_v54 }
  0x8c   : > { %4640 = vmatmul.mubr.f32.vlgmr.msra.gmra.mrb[0].mxu0 %v5615_v29 }
  0x8d   : > { %4966 = vmatpush3.bf16.msra.mxu0 %v5597_v9  ;;  %4682 = vmatmul.mubr.f32.vlgmr.msra.gmra.mrb[0].mxu1 %v5617_v30 }
  0x8e   : > { %4990 = vmatpush3.bf16.msra.mxu1 %v5597_v9  ;;  %4646 = vmatprep.mubr.f32.mxu0 %v5608_v23  ;;  %v4995_v9 = vpack.c.bf16 %v1328_v17, %v1321_v16 }
  0x8f   : > { %4688 = vmatprep.mubr.f32.mxu1 %v5613_v28  ;;  %4992 = vmatprep.subr.bf16.mxu0 %v5709_v8 }
  0x90   : > { %5016 = vmatprep.subr.bf16.mxu1 %v5709_v8 }
  0x94   : > { %4647 = vmatmul.mubr.f32.vlgmr.msra.gmra.mrb[0].mxu0 %v5615_v29 }
  0x95   : > { %4689 = vmatmul.mubr.f32.vlgmr.msra.gmra.mrb[0].mxu1 %v5617_v30  ;;  %4994 = vmatpush3.bf16.msra.mxu0 %v5709_v8 }
  0x96   : > { %5018 = vmatpush3.bf16.msra.mxu1 %v5709_v8  ;;  %4695 = vmatprep.mubr.f32.mxu0 %v1300_v21 }
  0x97   : > { %4996 = vmatprep.subr.bf16.mxu0 %v4995_v9  ;;  %4737 = vmatprep.mubr.f32.mxu1 %v1808_v22 }
  0x98   : > { %5020 = vmatprep.subr.bf16.mxu1 %v4995_v9 }
  0x9c   : > { %4696 = vmatmul.mubr.f32.vlgmr.msra.gmra.mrb[0].mxu0 %v1310_v26  ;;  %v5047_v26 = vpack.c.bf16 %v5760_v60, %v5758_v59 }
  0x9d   : > { %4998 = vmatpush3.bf16.msra.mxu0 %v4995_v9  ;;  %4738 = vmatmul.mubr.f32.vlgmr.msra.gmra.mrb[0].mxu1 %v1818_v27  ;;  %v2246_v27 = vld [vmem:[#allocation6 + $0x18] sm:$0xff] }
  0x9e   : > { %5022 = vmatpush3.bf16.msra.mxu1 %v4995_v9  ;;  %4702 = vmatprep.mubr.f32.mxu0 %v5680_v57 }
  0x9f   : > { %5000 = vmatprep.subr.bf16.mxu0 %v4999_v39  ;;  %4744 = vmatprep.mubr.f32.mxu1 %v5686_v61 }
  0xa0   : > { %5024 = vmatprep.subr.bf16.mxu1 %v4999_v39 }
  0xa4   : > { %4703 = vmatmul.mubr.f32.vlgmr.msra.gmra.mrb[0].mxu0 %v5704_v5 }
  0xa5   : > { %5002 = vmatpush3.bf16.msra.mxu0 %v4999_v39  ;;  %4745 = vmatmul.mubr.f32.vlgmr.msra.gmra.mrb[0].mxu1 %v5706_v6 }
  0xa6   : > { %5026 = vmatpush3.bf16.msra.mxu1 %v4999_v39  ;;  %4709 = vmatprep.mubr.f32.mxu0 %v5693_v0  ;;  %v5766_v0 = vand.u32 4294901760, %v2766_v58 }
  0xa7   : > { %5004 = vmatprep.subr.bf16.mxu0 %v5709_v8  ;;  %4751 = vmatprep.mubr.f32.mxu1 %v5701_v4  ;;  %v5777_v4 = vsub.f32 %v2763_v54, %v5762_v62 }
  0xa8   : > { %5028 = vmatprep.subr.bf16.mxu1 %v5709_v8  ;;  %v5784_v10 = vsub.f32 %v2766_v58, %v5766_v0 }
  0xa9   : > { %v2837_v15 = vand.u32 4294901760, %v5777_v4 }
  0xaa   : > { %v2847_v17 = vand.u32 4294901760, %v5784_v10 }
  0xab   : > { %v2838_v21 = vsub.f32 %v5777_v4, %v2837_v15 }
  0xac   : > { %4710 = vmatmul.mubr.f32.vlgmr.msra.gmra.mrb[0].mxu0 %v5716_v13  ;;  %v2351_v13 = vsub.f32 %v5758_v59, %v2350_v2  ;;  %v2848_v22 = vsub.f32 %v5784_v10, %v2847_v17 }
  0xad   : > { %5006 = vmatpush3.bf16.msra.mxu0 %v5709_v8  ;;  %4752 = vmatmul.mubr.f32.vlgmr.msra.gmra.mrb[0].mxu1 %v5721_v14  ;;  %v2358_v14 = vsub.f32 %v5760_v60, %v2357_v3  ;;  %v2839_v25 = vand.u32 4294901760, %v2838_v21 }
  0xae   : > { %5030 = vmatpush3.bf16.msra.mxu1 %v5709_v8  ;;  %4716 = vmatprep.mubr.f32.mxu0 %v1298_v7  ;;  %v5781_v7 = vsub.f32 %v2258_v55, %v5764_v63 }
  0xaf   : > { %5008 = vmatprep.subr.bf16.mxu0 %v5007_v40  ;;  %4758 = vmatprep.mubr.f32.mxu1 %v1806_v12  ;;  %v5787_v12 = vpack.c.bf16 %v2264_v51, %v2261_v50 }
  0xb0   : > { %5032 = vmatprep.subr.bf16.mxu1 %v5007_v40  ;;  %v2339_v16 = vand.u32 4294901760, %v5781_v7 }
  0xb2   : > { %v2340_v9 = vsub.f32 %v5781_v7, %v2339_v16 }
  0xb4   : > { %4717 = vmatmul.mubr.f32.vlgmr.msra.gmra.mrb[0].mxu0 %v1308_v19  ;;  %v2352_v19 = vand.u32 4294901760, %v2351_v13 }
  0xb5   : > { %5010 = vmatpush3.bf16.msra.mxu0 %v5007_v40  ;;  %4759 = vmatmul.mubr.f32.vlgmr.msra.gmra.mrb[0].mxu1 %v1816_v20  ;;  %v2359_v20 = vand.u32 4294901760, %v2358_v14 }
  0xb6   : > { %5034 = vmatpush3.bf16.msra.mxu1 %v5007_v40  ;;  %4723 = vmatprep.mubr.f32.mxu0 %v5680_v57  ;;  %v3274_v40 = vand.u32 4294901760, %v2246_v27 }
  0xb7   : > { %5012 = vmatprep.subr.bf16.mxu0 %v5709_v8  ;;  %4765 = vmatprep.mubr.f32.mxu1 %v5686_v61 }
  0xb8   : > { %5036 = vmatprep.subr.bf16.mxu1 %v5709_v8  ;;  %v3366_v42 = vsub.f32 %v2246_v27, %v3274_v40 }
  0xba   : > { %v3367_v48 = vand.u32 4294901760, %v3366_v42 }
  0xbc   : > { %4724 = vmatmul.mubr.f32.vlgmr.msra.gmra.mrb[0].mxu0 %v5704_v5  ;;  %v3368_v51 = vsub.f32 %v3366_v42, %v3367_v48 }
  0xbd   : > { %5014 = vmatpush3.bf16.msra.mxu0 %v5709_v8  ;;  %4766 = vmatmul.mubr.f32.vlgmr.msra.gmra.mrb[0].mxu1 %v5706_v6 }
  0xbe   : > { %5038 = vmatpush3.bf16.msra.mxu1 %v5709_v8  ;;  %4730 = vmatprep.mubr.f32.mxu0 %v5680_v57  ;;  %v5043_v8 = vpack.c.bf16 %v2359_v20, %v2352_v19  ;;  %v2341_v57 = vand.u32 4294901760, %v2340_v9  ;;  %v3369_v53 = vand.u32 4294901760, %v3368_v51 }
  0xbf   : > { %4772 = vmatprep.mubr.f32.mxu1 %v5686_v61  ;;  %5040 = vmatprep.subr.bf16.mxu0 %v5787_v12  ;;  %v2849_v61 = vand.u32 4294901760, %v2848_v22 }
  0xc0   : > { %5064 = vmatprep.subr.bf16.mxu1 %v5787_v12 }
  0xc4   : > { %4731 = vmatmul.mubr.f32.vlgmr.msra.gmra.mrb[0].mxu0 %v5704_v5  ;;  %v5055_v5 = vpack.c.bf16 %v2357_v3, %v2350_v2 }
  0xc5   : > { %4773 = vmatmul.mubr.f32.vlgmr.msra.gmra.mrb[0].mxu1 %v5706_v6  ;;  %5042 = vmatpush3.bf16.msra.mxu0 %v5787_v12  ;;  %v2245_v6 = vld [vmem:[#allocation6 + $0x10] sm:$0xff] }
  0xc6   : > { %5066 = vmatpush3.bf16.msra.mxu1 %v5787_v12  ;;  %4779 = vmatprep.mubr.f32.mxu0 %v2331_v24  ;;  %v3271_v39 = vand.u32 4294901760, %v2245_v6 }
  0xc7   : > { %5044 = vmatprep.subr.bf16.mxu0 %v5043_v8  ;;  %4821 = vmatprep.mubr.f32.mxu1 %v2839_v25 }
  0xc8   : > { %5068 = vmatprep.subr.bf16.mxu1 %v5043_v8  ;;  %4780 = vmatmul.mubr.f32.vlgmr.msra.gmra.mrb[2].mxu0 %v2341_v57  ;;  %v3359_v41 = vsub.f32 %v2245_v6, %v3271_v39  ;;  %v5087_v49 = vpack.c.bf16 %v3274_v40, %v3271_v39 }
  0xc9   : > { %5046 = vmatpush3.bf16.msra.mxu0 %v5043_v8  ;;  %4822 = vmatmul.mubr.f32.vlgmr.msra.gmra.mrb[2].mxu1 %v2849_v61 }
  0xca   : > { %5070 = vmatpush3.bf16.msra.mxu1 %v5043_v8  ;;  %4786 = vmatprep.mubr.f32.mxu0 %v5755_v56  ;;  %v3360_v47 = vand.u32 4294901760, %v3359_v41  ;;  %v5095_v55 = vpack.c.bf16 %v3366_v42, %v3359_v41 }
  0xcb   : > { %5048 = vmatprep.subr.bf16.mxu0 %v5047_v26  ;;  %4828 = vmatprep.mubr.f32.mxu1 %v5762_v62 }
  0xcc   : > { %5072 = vmatprep.subr.bf16.mxu1 %v5047_v26  ;;  %v3361_v50 = vsub.f32 %v3359_v41, %v3360_v47 }
  0xce   : > { %v3362_v52 = vand.u32 4294901760, %v3361_v50 }
  0xd0   : > { %4787 = vmatmul.mubr.f32.vlgmr.msra.gmra.mrb[2].mxu0 %v5764_v63  ;;  %v5091_v54 = vpack.c.bf16 %v3369_v53, %v3362_v52 }
  0xd1   : > { %5050 = vmatpush3.bf16.msra.mxu0 %v5047_v26  ;;  %4829 = vmatmul.mubr.f32.vlgmr.msra.gmra.mrb[2].mxu1 %v5766_v0 }
  0xd2   : > { %5074 = vmatpush3.bf16.msra.mxu1 %v5047_v26  ;;  %4793 = vmatprep.mubr.f32.mxu0 %v5770_v1 }
  0xd3   : > { %5052 = vmatprep.subr.bf16.mxu0 %v5787_v12  ;;  %4835 = vmatprep.mubr.f32.mxu1 %v5777_v4 }
  0xd4   : > { %5076 = vmatprep.subr.bf16.mxu1 %v5787_v12 }
  0xd8   : > { %4794 = vmatmul.mubr.f32.vlgmr.msra.gmra.mrb[2].mxu0 %v5781_v7 }
  0xd9   : > { %5054 = vmatpush3.bf16.msra.mxu0 %v5787_v12  ;;  %4836 = vmatmul.mubr.f32.vlgmr.msra.gmra.mrb[2].mxu1 %v5784_v10 }
  0xda   : > { %5078 = vmatpush3.bf16.msra.mxu1 %v5787_v12  ;;  %4800 = vmatprep.mubr.f32.mxu0 %v2329_v11 }
  0xdb   : > { %5056 = vmatprep.subr.bf16.mxu0 %v5055_v5  ;;  %4842 = vmatprep.mubr.f32.mxu1 %v2837_v15 }
  0xdc   : > { %5080 = vmatprep.subr.bf16.mxu1 %v5055_v5 }
  0xe0   : > { %4801 = vmatmul.mubr.f32.vlgmr.msra.gmra.mrb[2].mxu0 %v2339_v16 }
  0xe1   : > { %5058 = vmatpush3.bf16.msra.mxu0 %v5055_v5  ;;  %4843 = vmatmul.mubr.f32.vlgmr.msra.gmra.mrb[2].mxu1 %v2847_v17 }
  0xe2   : > { %5082 = vmatpush3.bf16.msra.mxu1 %v5055_v5  ;;  %4807 = vmatprep.mubr.f32.mxu0 %v5755_v56 }
  0xe3   : > { %5060 = vmatprep.subr.bf16.mxu0 %v5787_v12  ;;  %4849 = vmatprep.mubr.f32.mxu1 %v5762_v62 }
  0xe4   : > { %5084 = vmatprep.subr.bf16.mxu1 %v5787_v12 }
  0xe8   : > { %4808 = vmatmul.mubr.f32.vlgmr.msra.gmra.mrb[2].mxu0 %v5764_v63 }
  0xe9   : > { %5062 = vmatpush3.bf16.msra.mxu0 %v5787_v12  ;;  %4850 = vmatmul.mubr.f32.vlgmr.msra.gmra.mrb[2].mxu1 %v5766_v0 }
  0xea   : > { %5086 = vmatpush3.bf16.msra.mxu1 %v5787_v12  ;;  %4814 = vmatprep.mubr.f32.mxu0 %v5755_v56 }
  0xeb   : > { %4856 = vmatprep.mubr.f32.mxu1 %v5762_v62  ;;  %5088 = vmatprep.subr.bf16.mxu0 %v5087_v49 }
  0xec   : > { %5112 = vmatprep.subr.bf16.mxu1 %v5087_v49 }
  0xf0   : > { %4815 = vmatmul.mubr.f32.vlgmr.msra.gmra.mrb[2].mxu0 %v5764_v63 }
  0xf1   : > { %4857 = vmatmul.mubr.f32.vlgmr.msra.gmra.mrb[2].mxu1 %v5766_v0  ;;  %5090 = vmatpush3.bf16.msra.mxu0 %v5087_v49 }
  0xf2   : > { %5114 = vmatpush3.bf16.msra.mxu1 %v5087_v49  ;;  %4863 = vmatprep.mubr.f32.mxu0 %v5651_v43  ;;  %v5103_v43 = vpack.c.bf16 %v3367_v48, %v3360_v47 }
  0xf3   : > { %5092 = vmatprep.subr.bf16.mxu0 %v5091_v54  ;;  %4905 = vmatprep.mubr.f32.mxu1 %v5653_v44 }
  0xf4   : > { %5116 = vmatprep.subr.bf16.mxu1 %v5091_v54 }
  0xf8   : > { %4864 = vmatmul.mubr.f32.vlgmr.msra.gmra.mrb[2].mxu0 %v5655_v45 }
  0xf9   : > { %5094 = vmatpush3.bf16.msra.mxu0 %v5091_v54  ;;  %4906 = vmatmul.mubr.f32.vlgmr.msra.gmra.mrb[2].mxu1 %v5657_v46 }
  0xfa   : > { %5118 = vmatpush3.bf16.msra.mxu1 %v5091_v54  ;;  %4870 = vmatprep.mubr.f32.mxu0 %v5608_v23 }
  0xfb   : > { %5096 = vmatprep.subr.bf16.mxu0 %v5095_v55  ;;  %4912 = vmatprep.mubr.f32.mxu1 %v5613_v28 }
  0xfc   : > { %5120 = vmatprep.subr.bf16.mxu1 %v5095_v55 }
 0x100   : > { %4871 = vmatmul.mubr.f32.vlgmr.msra.gmra.mrb[2].mxu0 %v5615_v29 }
 0x101   : > { %5098 = vmatpush3.bf16.msra.mxu0 %v5095_v55  ;;  %4913 = vmatmul.mubr.f32.vlgmr.msra.gmra.mrb[2].mxu1 %v5617_v30 }
 0x102   : > { %5122 = vmatpush3.bf16.msra.mxu1 %v5095_v55  ;;  %4877 = vmatprep.mubr.f32.mxu0 %v5620_v31 }
 0x103   : > { %5100 = vmatprep.subr.bf16.mxu0 %v5087_v49  ;;  %4919 = vmatprep.mubr.f32.mxu1 %v5623_v32 }
 0x104   : > { %5124 = vmatprep.subr.bf16.mxu1 %v5087_v49 }
 0x108   : > { %4878 = vmatmul.mubr.f32.vlgmr.msra.gmra.mrb[2].mxu0 %v5626_v33 }
 0x109   : > { %5102 = vmatpush3.bf16.msra.mxu0 %v5087_v49  ;;  %4920 = vmatmul.mubr.f32.vlgmr.msra.gmra.mrb[2].mxu1 %v5629_v34 }
 0x10a   : > { %5126 = vmatpush3.bf16.msra.mxu1 %v5087_v49  ;;  %4884 = vmatprep.mubr.f32.mxu0 %v5632_v35 }
 0x10b   : > { %5104 = vmatprep.subr.bf16.mxu0 %v5103_v43  ;;  %4926 = vmatprep.mubr.f32.mxu1 %v5635_v36 }
 0x10c   : > { %5128 = vmatprep.subr.bf16.mxu1 %v5103_v43 }
 0x110   : > { %4885 = vmatmul.mubr.f32.vlgmr.msra.gmra.mrb[2].mxu0 %v5638_v37 }
 0x111   : > { %5106 = vmatpush3.bf16.msra.mxu0 %v5103_v43  ;;  %4927 = vmatmul.mubr.f32.vlgmr.msra.gmra.mrb[2].mxu1 %v5641_v38 }
 0x112   : > { %5130 = vmatpush3.bf16.msra.mxu1 %v5103_v43  ;;  %4891 = vmatprep.mubr.f32.mxu0 %v5608_v23 }
 0x113   : > { %5108 = vmatprep.subr.bf16.mxu0 %v5087_v49  ;;  %4933 = vmatprep.mubr.f32.mxu1 %v5613_v28 }
 0x114   : > { %5132 = vmatprep.subr.bf16.mxu1 %v5087_v49 }
 0x118   : > { %4892 = vmatmul.mubr.f32.vlgmr.msra.gmra.mrb[2].mxu0 %v5615_v29 }
 0x119   : > { %5110 = vmatpush3.bf16.msra.mxu0 %v5087_v49  ;;  %4934 = vmatmul.mubr.f32.vlgmr.msra.gmra.mrb[2].mxu1 %v5617_v30 }
 0x11a   : > { %5134 = vmatpush3.bf16.msra.mxu1 %v5087_v49  ;;  %4898 = vmatprep.mubr.f32.mxu0 %v5608_v23 }
 0x11b   : > { %4940 = vmatprep.mubr.f32.mxu1 %v5613_v28 }
 0x120   : > { %4899 = vmatmul.mubr.f32.vlgmr.msra.gmra.mrb[2].mxu0 %v5615_v29 }
 0x121   : > { %4941 = vmatmul.mubr.f32.vlgmr.msra.gmra.mrb[2].mxu1 %v5617_v30 }
 0x197   : > { %v4732_v31 = vpop.f32.mrb[0].mxu0 }
 0x198   : > { %2241 = vst.msk [vmem:[%s177_s15 + $0x8] sm:$0xff] %vm2239_vm2, %v4732_v31  ;;  %v4774_v32 = vpop.f32.mrb[0].mxu1  ;;  %v1721_v33 = vpop.f32.mrb[1].mxu0 }
 0x199   : > { %2243 = vst.msk [vmem:[%s177_s15 + $0x18] sm:$0xff] %vm2239_vm2, %v4774_v32  ;;  %2240 = vst.msk [vmem:[%s177_s15] sm:$0xff] %vm2239_vm2, %v1721_v33  ;;  %v2229_v34 = vpop.f32.mrb[1].mxu1 }
 0x19a   : > { %2242 = vst.msk [vmem:[%s177_s15 + $0x10] sm:$0xff] %vm2239_vm2, %v2229_v34 }
 0x1f3   : > { %v4900_v35 = vpop.f32.mrb[2].mxu0 }
 0x1f4   : > { %v4942_v23 = vpop.f32.mrb[2].mxu1  ;;  %v3762_v36 = vpop.f32.mrb[3].mxu0 }
 0x1f5   : > { %v4264_v28 = vpop.f32.mrb[3].mxu1  ;;  %4278 = vrot.lane.b32.xlu0 %v3762_v36, %s5421_s17 }
 0x1f6   : > { %4282 = vrot.lane.b32.xlu1 %v4264_v28, %s5421_s17 }
 0x1f9   : > { %4280 = vrot.lane.b32.xlu0 %v4900_v35, %s5421_s17 }
 0x1fa   : > { %4284 = vrot.lane.b32.xlu1 %v4942_v23, %s5421_s17 }
 0x267   : > { %v4279_v29 = vpop.permute.xlu0 %4278 }
 0x268   : > { %v4283_v30 = vpop.permute.xlu1 %4282  ;;  %4291 = vst.msk [vmem:[%s177_s15] sm:$0xff] %vm4290_vm3, %v4279_v29 }
 0x269   : > { %4293 = vst.msk [vmem:[%s177_s15 + $0x10] sm:$0xff] %vm4290_vm3, %v4283_v30 }
 0x26b   : > { %v4281_v37 = vpop.permute.xlu0 %4280 }
 0x26c   : > { %v4285_v38 = vpop.permute.xlu1 %4284  ;;  %4292 = vst.msk [vmem:[%s177_s15 + $0x8] sm:$0xff] %vm4290_vm3, %v4281_v37 }
 0x26d   : > { %4294 = vst.msk [vmem:[%s177_s15 + $0x18] sm:$0xff] %vm4290_vm3, %v4285_v38 }
 0x26e   : > { %5357 = shalt.err (!%p5354_p7)
}
 0x26f   : > { %s5358_s18 = scalar_lea.hbm %s5866_s28, 512  ;;  %s5362_s26 = scalar_lea.hbm %s5913_s2, 2048 }
 0x270   : > { %p5359_p9 = scmp.ne.s32.totalorder %s5866_s28, %s5358_s18  ;;  %p5363_p5 = scmp.lt.u32.totalorder %s5866_s28, %s5913_s2 }
 0x271   : > { %p5364_p10 = scmp.lt.u32.totalorder %s5362_s26, %s5358_s18  ;;  %p5366_p4 = scmp.lt.u32.totalorder %s5358_s18, %s5866_s28 }
 0x272   : > { %p5360_p1 = pnand %p5359_p9, %p5526_p12 }
 0x273   : > { %p5365_p2 = por %p5364_p10, %p5363_p5 }
 0x274   : > { %p5361_p0 = pneg %p5360_p1 }
 0x275   : > { %p5367_p6 = por %p5366_p4, %p5365_p2 }
 0x277   : > { %p5368_p8 = pnand %p5367_p6, %p5361_p0 }
 0x279   : > { %5371 = shalt.err (!%p5368_p8)
}
 0x27a   : > { %s5423_s23 = smov 128   ;;  %s5424_s15 = smov 8  }
 0x27b   : > { %5229 = dma.vmem_to_hbm [thread:$0]  (%p5526_p12), %s5868_s5, 512, %s5866_s28, %s4296_s3, %s5423_s23, %s5423_s23, %s5424_s15  }
 0x27c PF: > { %p5246_p11 = scmp.ge.s32.totalorder %s5414_s12, 2  ;;  %s4325_s17 = sand.u32 1, %s5402_s9  }
 0x27d   : > { %p5928_p13 = scmp.ne.s32.totalorder %s5918_s16, 0  ;;  %s4326_s4 = scalar_lea.sflag [#allocation5], %s4325_s17 }
 0x27f   : > { %p5240_p3 = pnand %p5246_p11, %p5928_p13 }
 0x281   : > { %5397 = dma.done.wait (!%p5240_p3), %s4326_s4, 512  }
 0x282   : > { %5399 = vsyncadd (!%p5240_p3), %s4326_s4, 4294966784  ;;  %p16_p7 = scmp.ge.s32.totalorder %s5493_s21, 6   ;;  %s5929_s9 = smov %s5406_s10 }
 0x283   : > { %s5930_s10 = smov %s5410_s11  ;;  %s5931_s11 = smov %s5522_s8 }
 0x284   : > { %s5932_s12 = smov %s5493_s21  ;;  %18 = sbr.rel (!%p16_p7) target bundleno = 6 (0x6), region = 80 }
 0x28b   :  { %4331 = vsyncpa [#allocation4], 1 }
 0x28c   :  { %4333 = vsyncpa [#allocation4 + $0x1], 1 }
 0x28d   :  { %4334 = vsyncpa [#allocation7], 1 }
 0x28e   :  { %4335 = vsyncpa [#allocation5], 1 }
 0x28f   :  { %4337 = vsyncpa [#allocation5 + $0x1], 1 }

</bundles_post_ra>
